<compile_context>
chip_gen: v5e
topology: v5e:2x2
jax: 0.10.0
libtpu: 0.0.40
codegen_flags: <defaults>
</compile_context>

<pallas_src>
import functools

import jax
import jax.numpy as jnp
from jax.experimental import pallas as pl
from jax.experimental.pallas import tpu as pltpu

EMBED_DIM = 32
PACK = 4                       # batch rows packed per 128-lane vreg row
PACKED_DIM = EMBED_DIM * PACK  # 128


def odef2_kernel(y_ref, w1_ref, w2_ref, o_ref):
    # Linear -> ReLU -> Linear, all in VMEM.
    # bf16 operands, f32 accumulation (preferred_element_type) on the MXU.
    y = y_ref[...].astype(jnp.bfloat16)
    h = jnp.dot(y, w1_ref[...], preferred_element_type=jnp.float32)
    h = jnp.maximum(h, 0.0).astype(jnp.bfloat16)   # ReLU in f32, bf16 for second MXU pass
    out = jnp.dot(h, w2_ref[...], preferred_element_type=jnp.float32)
    o_ref[...] = out.astype(o_ref.dtype)


def pack_weights(w1, w2):
    """Build the 128x128 block-diagonal, pre-transposed bf16 weights ONCE (outside the hot loop).

    w1, w2 have PyTorch nn.Linear layout (out_features, in_features).
    kron(I_4, W.T) places 4 copies of W.T on the diagonal, so a packed row
    [y0|y1|y2|y3] @ kron(I, W.T) = [y0@W.T | y1@W.T | y2@W.T | y3@W.T].
    """
    def blockdiag_t(w):
        wt = w.T.astype(jnp.float32)                                  # (in, out)
        return jnp.kron(jnp.eye(PACK, dtype=wt.dtype), wt).astype(jnp.bfloat16)  # (128, 128)
    return blockdiag_t(w1), blockdiag_t(w2)


def _round_up(x, m):
    return ((x + m - 1) // m) * m


@functools.partial(jax.jit, static_argnames=("block_rows",))
def odef2_forward(t, y, w1p, w2p, *, block_rows=4096):
    """Equivalent of ODEF2.forward(t, y) = Linear(W2) . ReLU . Linear(W1) applied to y.

    t is ignored (matches the PyTorch module). w1p/w2p are the packed 128x128
    block-diagonal bf16 weights from pack_weights(). Input/output stay f32.
    """
    del t
    batch, d = y.shape
    assert d == EMBED_DIM

    # --- lane-dense packing: 4 rows -> one 128-wide row (row-major reshape is free) ---
    pad_rows = (-batch) % PACK
    if pad_rows:
        y = jnp.pad(y, ((0, pad_rows), (0, 0)))      # <=3 rows, negligible
    bp = y.shape[0] // PACK
    y_packed = y.reshape(bp, PACKED_DIM)

    # --- batch tile selection (NO full-array jnp.pad: ragged last block is masked
    #     by Pallas; garbage rows are independent and sliced off below) ---
    if bp <= 8:
        tb = bp                                       # tiny batch: single full-dim block
    else:
        # >=2 tiles whenever possible so ("parallel",) shards across both v7x TCs;
        # cap at block_rows (4096 packed rows = 2 MiB f32 in + 2 MiB out per tile).
        tb = min(_round_up(pl.cdiv(bp, 2), 8), block_rows)
    grid_rows = pl.cdiv(bp, tb)

    cost = pl.CostEstimate(
        flops=2 * 2 * bp * PACKED_DIM * PACKED_DIM,
        transcendentals=0,
        bytes_accessed=2 * bp * PACKED_DIM * 4 + 2 * PACKED_DIM * PACKED_DIM * 2,
    )

    out_packed = pl.pallas_call(
        odef2_kernel,
        out_shape=jax.ShapeDtypeStruct((bp, PACKED_DIM), y.dtype),
        grid_spec=pltpu.PrefetchScalarGridSpec(
            num_scalar_prefetch=0,
            grid=(grid_rows,),
            in_specs=[
                pl.BlockSpec((tb, PACKED_DIM), lambda i: (i, 0)),
                # constant index_map -> weights stay VMEM-resident across grid steps
                pl.BlockSpec((PACKED_DIM, PACKED_DIM), lambda i: (0, 0)),
                pl.BlockSpec((PACKED_DIM, PACKED_DIM), lambda i: (0, 0)),
            ],
            out_specs=pl.BlockSpec((tb, PACKED_DIM), lambda i: (i, 0)),
        ),
        compiler_params=pltpu.CompilerParams(
            # independent batch tiles: shard across both TensorCores on v7x
            dimension_semantics=("parallel",),
        ),
        cost_estimate=cost,
    )(y_packed, w1p, w2p)

    # unpack and drop padding
    return out_packed.reshape(-1, EMBED_DIM)[:batch]

# TODO(synk): when used as the RHS of an ODE integrator, fuse the time-stepping loop
# into a single pallas_call (weights held in VMEM scratch, state carried via
# input_output_aliases) to amortize launch/DMA cost across all RHS evaluations.


if __name__ == "__main__":
    key = jax.random.PRNGKey(0)
    k_y, k_w1, k_w2 = jax.random.split(key, 3)

    # deterministic synthetic inputs / parameters (nn.Linear(32, 32, bias=False) x2)
    bound = 1.0 / (EMBED_DIM ** 0.5)  # mimic PyTorch kaiming-uniform-ish scale
    w1 = jax.random.uniform(k_w1, (EMBED_DIM, EMBED_DIM), jnp.float32, -bound, bound)
    w2 = jax.random.uniform(k_w2, (EMBED_DIM, EMBED_DIM), jnp.float32, -bound, bound)
    t = jnp.zeros((), jnp.float32)  # unused, as in the PyTorch module

    # Pack weights once, reuse across calls (no per-call transpose / packing work).
    w1p, w2p = pack_weights(w1, w2)

    def ref_fn(y):
        return jnp.maximum(y @ w1.T, 0.0) @ w2.T

    # bf16 MXU operands -> relaxed tolerance vs the f32 reference (~1e-2 relative).
    ATOL = RTOL = 5e-2

    # small batch divisible by PACK (single full-dim block)
    batch = 8
    y = jax.random.normal(k_y, (batch, EMBED_DIM), dtype=jnp.float32)
    out = jax.block_until_ready(odef2_forward(t, y, w1p, w2p))
    assert out.shape == (batch, EMBED_DIM)
    assert jnp.allclose(out, ref_fn(y), atol=ATOL, rtol=RTOL)

    # batch NOT divisible by PACK (exercises the <=3-row PACK padding path)
    batch2 = 6
    y2 = jax.random.normal(jax.random.PRNGKey(1), (batch2, EMBED_DIM), dtype=jnp.float32)
    out2 = jax.block_until_ready(odef2_forward(t, y2, w1p, w2p))
    assert out2.shape == (batch2, EMBED_DIM)
    assert jnp.allclose(out2, ref_fn(y2), atol=ATOL, rtol=RTOL)

    # medium batch: multi-tile grid with a ragged last block (no full-array jnp.pad)
    batch3 = 100
    y3 = jax.random.normal(jax.random.PRNGKey(2), (batch3, EMBED_DIM), dtype=jnp.float32)
    out3 = jax.block_until_ready(odef2_forward(t, y3, w1p, w2p))
    assert out3.shape == (batch3, EMBED_DIM)
    assert jnp.allclose(out3, ref_fn(y3), atol=ATOL, rtol=RTOL)

    print("KERNEL_OK")
</pallas_src>

<mosaic_0001>
module attributes {stable_mosaic.version = 11 : i64} {
  func.func @odef2_kernel(%arg0: i32, %arg1: memref<2x128xf32, #tpu.memory_space<vmem>>, %arg2: memref<128x128xbf16, #tpu.memory_space<vmem>>, %arg3: memref<128x128xbf16, #tpu.memory_space<vmem>>, %arg4: memref<2x128xf32, #tpu.memory_space<vmem>>) attributes {dimension_semantics = [#tpu.dimension_semantics<parallel>], iteration_bounds = array<i64: 1>, scalar_prefetch = 0 : i64, scratch_operands = 0 : i64, tpu.core_type = #tpu.core_type<tc>, window_params = [{transform_indices = @transform_0, window_bounds = array<i64: 2, 128>}, {pipeline_mode = #tpu.pipeline_mode<synchronous>, transform_indices = @transform_1, window_bounds = array<i64: 128, 128>}, {pipeline_mode = #tpu.pipeline_mode<synchronous>, transform_indices = @transform_2, window_bounds = array<i64: 128, 128>}, {transform_indices = @transform_3, window_bounds = array<i64: 2, 128>}]} {
    %c0 = arith.constant 0 : index
    %c0_0 = arith.constant 0 : index
    %0 = vector.load %arg1[%c0, %c0_0] : memref<2x128xf32, #tpu.memory_space<vmem>>, vector<2x128xf32>
    %1 = arith.truncf %0 : vector<2x128xf32> to vector<2x128xbf16>
    %c0_1 = arith.constant 0 : index
    %c0_2 = arith.constant 0 : index
    %2 = vector.load %arg2[%c0_1, %c0_2] : memref<128x128xbf16, #tpu.memory_space<vmem>>, vector<128x128xbf16>
    %cst = arith.constant dense<0.000000e+00> : vector<2x128xf32>
    %3 = tpu.matmul %1, %2, %cst {dimension_numbers = #tpu.dot_dimension_numbers<[1], [0], [0], [1], [0, 0, 1, 1], [], []>} : vector<2x128xbf16>, vector<128x128xbf16>, vector<2x128xf32> -> vector<2x128xf32>
    %cst_3 = arith.constant 0.000000e+00 : f32
    %4 = vector.broadcast %cst_3 : f32 to vector<2x128xf32>
    %5 = arith.maximumf %3, %4 : vector<2x128xf32>
    %6 = arith.truncf %5 : vector<2x128xf32> to vector<2x128xbf16>
    %c0_4 = arith.constant 0 : index
    %c0_5 = arith.constant 0 : index
    %7 = vector.load %arg3[%c0_4, %c0_5] : memref<128x128xbf16, #tpu.memory_space<vmem>>, vector<128x128xbf16>
    %cst_6 = arith.constant dense<0.000000e+00> : vector<2x128xf32>
    %8 = tpu.matmul %6, %7, %cst_6 {dimension_numbers = #tpu.dot_dimension_numbers<[1], [0], [0], [1], [0, 0, 1, 1], [], []>} : vector<2x128xbf16>, vector<128x128xbf16>, vector<2x128xf32> -> vector<2x128xf32>
    %c0_7 = arith.constant 0 : index
    %c0_8 = arith.constant 0 : index
    %9 = vector.load %arg4[%c0_7, %c0_8] : memref<2x128xf32, #tpu.memory_space<vmem>>, vector<2x128xf32>
    tpu.vector_store %arg4[%c0_7, %c0_8], %8 {strides = array<i32>} : memref<2x128xf32, #tpu.memory_space<vmem>>, vector<2x128xf32>,
    return
  }
  func.func @transform_0(%arg0: i32) -> (i32, i32) {
    %c0_i32 = arith.constant 0 : i32
    %c0_i32_0 = arith.constant 0 : i32
    return %arg0, %c0_i32 : i32, i32
  }
  func.func @transform_1(%arg0: i32) -> (i32, i32) {
    %c0_i32 = arith.constant 0 : i32
    %c0_i32_0 = arith.constant 0 : i32
    %c0_i32_1 = arith.constant 0 : i32
    return %c0_i32, %c0_i32_0 : i32, i32
  }
  func.func @transform_2(%arg0: i32) -> (i32, i32) {
    %c0_i32 = arith.constant 0 : i32
    %c0_i32_0 = arith.constant 0 : i32
    %c0_i32_1 = arith.constant 0 : i32
    return %c0_i32, %c0_i32_0 : i32, i32
  }
  func.func @transform_3(%arg0: i32) -> (i32, i32) {
    %c0_i32 = arith.constant 0 : i32
    %c0_i32_0 = arith.constant 0 : i32
    return %arg0, %c0_i32 : i32, i32
  }
}

</mosaic_0001>

<bundles_post_ra>
// kernel: odef2_forward.1
= control target key start
LH: loop header
LB: loop body
LE: loop exit
PB: predicated region body
PF: predicated region fallthrough
CT: control target
= control target key end

     0   :  { %8 = vsyncpa [#allocation3], 0  ;;  %s383_s0 = inlined_call_operand.vmem [shape: f32[2,128], index: 0, kind: input, shape index: {}]   ;;  %s384_s1 = inlined_call_operand.hbm [shape: bf16[128,128], index: 1, kind: input, shape index: {}]   ;;  %s385_s2 = inlined_call_operand.hbm [shape: bf16[128,128], index: 2, kind: input, shape index: {}]   ;;  %s386_s3 = inlined_call_operand.vmem [shape: f32[2,128], index: 3, kind: output, shape index: {}]  }
   0x1   :  { %s16_s14 = sshll.u32 %s384_s1, 4  ;;  %s17_s14 = int_to_ptr.hbm [resolvable:$true] %s16_s14 }
   0x2   :  { %9 = vsyncpa [#allocation5], 0  ;;  %s347_s15 = smov [#allocation2]   ;;  %s29_s19 = sshll.u32 %s385_s2, 4  ;;  %s30_s19 = int_to_ptr.hbm [resolvable:$true] %s29_s19 }
   0x3   :  { %s18_s16 = sshll.u32 %s347_s15, 4  ;;  %s348_s20 = smov 64   ;;  %s19_s16 = int_to_ptr.vmem [resolvable:$true] %s18_s16 }
   0x4   :  { %s349_s21 = smov 4   ;;  %s350_s22 = smov [#allocation4]  }
   0x5   :  { %24 = dma.hbm_to_vmem [thread:$0]  %s17_s14, 1024, %s19_s16, [#allocation3], %s348_s20, %s348_s20, %s349_s21  }
   0x6   :  { %s31_s23 = sshll.u32 %s350_s22, 4  ;;  %s32_s23 = int_to_ptr.vmem [resolvable:$true] %s31_s23 }
   0x7   :  { %37 = dma.hbm_to_vmem [thread:$0]  %s30_s19, 1024, %s32_s23, [#allocation5], %s348_s20, %s348_s20, %s349_s21  }
   0x8   :  { %343 = dma.done.wait [#allocation3], 1024  }
   0x9   :  { %344 = vsyncadd [#allocation3], 4294966272 }
   0xa   :  { %345 = dma.done.wait [#allocation5], 1024  }
   0xb   :  { %346 = vsyncadd [#allocation5], 4294966272  ;;  %v282_v0 = vld [vmem:[#allocation2 + $0x38] sm:$0xff]  ;;  %v281_v1 = vld [vmem:[#allocation2 + $0x30] sm:$0xff] }
   0xc   :  { %112 = vmatpush.bf16.msra.mxu0 %v282_v0  ;;  %v290_v2 = vld [vmem:[#allocation4 + $0x38] sm:$0xff]  ;;  %v289_v3 = vld [vmem:[#allocation4 + $0x30] sm:$0xff]  ;;  %v280_v4 = vld [vmem:[#allocation2 + $0x28] sm:$0xff] }
   0xd   :  { %191 = vmatpush.bf16.msra.mxu1 %v290_v2  ;;  %v288_v5 = vld [vmem:[#allocation4 + $0x28] sm:$0xff]  ;;  %v279_v6 = vld [vmem:[#allocation2 + $0x20] sm:$0xff]  ;;  %v278_v8 = vld [vmem:[#allocation2 + $0x18] sm:$0xff] }
   0xe   :  { %v287_v7 = vld [vmem:[#allocation4 + $0x20] sm:$0xff]  ;;  %v286_v9 = vld [vmem:[#allocation4 + $0x18] sm:$0xff]  ;;  %v277_v10 = vld [vmem:[#allocation2 + $0x10] sm:$0xff] }
   0xf   :  { %v285_v11 = vld [vmem:[#allocation4 + $0x10] sm:$0xff]  ;;  %v276_v12 = vld [vmem:[#allocation2 + $0x8] sm:$0xff]  ;;  %v275_v14 = vld [vmem:[#allocation2] sm:$0xff] }
  0x10   :  { %113 = vmatpush.bf16.msra.mxu0 %v281_v1  ;;  %v284_v13 = vld [vmem:[#allocation4 + $0x8] sm:$0xff]  ;;  %v46_v15 = vld [vmem:[%s383_s0] sm:$0x3] }
  0x11   :  { %192 = vmatpush.bf16.msra.mxu1 %v289_v3  ;;  %v47_v16 = vpack.c.bf16 %v46_v15, %v46_v15  ;;  %v283_v17 = vld [vmem:[#allocation4] sm:$0xff] }
  0x14   :  { %114 = vmatpush.bf16.msra.mxu0 %v280_v4 }
  0x15   :  { %193 = vmatpush.bf16.msra.mxu1 %v288_v5 }
  0x18   :  { %115 = vmatpush.bf16.msra.mxu0 %v279_v6 }
  0x19   :  { %194 = vmatpush.bf16.msra.mxu1 %v287_v7 }
  0x1c   :  { %116 = vmatpush.bf16.msra.mxu0 %v278_v8 }
  0x1d   :  { %195 = vmatpush.bf16.msra.mxu1 %v286_v9 }
  0x20   :  { %117 = vmatpush.bf16.msra.mxu0 %v277_v10 }
  0x21   :  { %196 = vmatpush.bf16.msra.mxu1 %v285_v11 }
  0x24   :  { %118 = vmatpush.bf16.msra.mxu0 %v276_v12 }
  0x25   :  { %197 = vmatpush.bf16.msra.mxu1 %v284_v13 }
  0x28   :  { %119 = vmatpush.bf16.msra.mxu0 %v275_v14 }
  0x29   :  { %198 = vmatpush.bf16.msra.mxu1 %v283_v17 }
  0x2b   :  { %120 = vmatmul.bf16.vlgmr.msra.gmra.mxu0 %v47_v16 }
  0xa8   :  { %v121_v18 = vpop.f32.mrf.mxu0 }
  0xa9   :  { %v125_v19 = vmax.f32 %v121_v18, 0.0 }
  0xab   :  { %v126_v20 = vpack.c.bf16 %v125_v19, %v125_v19 }
  0xad   :  { %199 = vmatmul.bf16.vlgmr.msra.gmra.mxu1 %v126_v20 }
  0xb0   :  { %v123_v21 = vpop.f32.mrf.mxu0 }
 0x12a   :  { %v200_v22 = vpop.f32.mrf.mxu1 }
 0x12b   :  { %204 = vst [vmem:[%s386_s3] sm:$0x3] %v200_v22 }
 0x132   :  { %v202_v23 = vpop.f32.mrf.mxu1 }
 0x133   :  { %209 = vsyncpa [#allocation3], 1 }
 0x134   :  { %210 = vsyncpa [#allocation5], 1 }

</bundles_post_ra>
